<compile_context>
chip_gen: v5e
topology: v5e:2x2
jax: 0.10.0
libtpu: 0.0.40
codegen_flags: <defaults>
</compile_context>

<pallas_src>
import math

import jax
import jax.numpy as jnp
from jax.experimental import pallas as pl
from jax.experimental.pallas import tpu as pltpu


def _round_up(n, m):
    return ((n + m - 1) // m) * m


# ----------------------------- Pallas kernel ---------------------------------

def _gelu(v):
    # tanh-approximate GELU -> EUP transcendental slot (its own VLIW slot) instead of an
    # erf polynomial on the VALU.  Bit-parity with nn.GELU() (exact erf) is traded for a
    # ~1e-3 absolute deviation; tolerance re-validated against the exact-GELU reference.
    return jax.nn.gelu(v, approximate=True)


def noise_network_kernel(xct_ref, w0_ref, b0_ref, wb_ref, bb_ref, wo_ref, bo_ref, out_ref):
    f32 = jnp.float32

    # Fused (3 embedding Linears + first joint Linear) -> ONE matmul.  Kept in f32:
    # K = input+cond+1 is tiny so MXU cost is negligible, and the timestep feature keeps
    # full f32 resolution instead of being quantized to bf16.
    h = jnp.dot(xct_ref[...], w0_ref[...], preferred_element_type=f32) + b0_ref[...]
    h = _gelu(h)

    # Residual blocks: h = h + GELU(h @ W_i + b_i).  Stacked weights (L, H, H), bf16 MXU
    # operands with f32 accumulation; residual math stays f32.  The per-block f32->bf16
    # cast is unavoidable (h is updated each block); with GELU on the EUP these casts and
    # the bias broadcasts are VPU filler rather than the binding slot.
    for i in range(wb_ref.shape[0]):
        z = jnp.dot(h.astype(wb_ref.dtype), wb_ref[i], preferred_element_type=f32) + bb_ref[i]
        h = h + _gelu(z)

    # Output projection.  out_ref is either a lane-dense padded slab (unmasked vst) or the
    # exact (tb, input_size) block (masked vst, far fewer HBM bytes) -- chosen by the wrapper.
    out_ref[...] = (
        jnp.dot(h.astype(wo_ref.dtype), wo_ref[...], preferred_element_type=f32) + bo_ref[...]
    ).astype(out_ref.dtype)


# ----------------------------- params / folding -------------------------------

def init_params(key, input_size, condition_size, emb_size, hidden_size, hidden_layers):
    """Deterministic synthetic parameters (PyTorch-Linear style). Weights are (in, out)."""
    def lin(k, fan_in, fan_out):
        kw, kb = jax.random.split(k)
        s = 1.0 / math.sqrt(fan_in)
        w = jax.random.uniform(kw, (fan_in, fan_out), jnp.float32, -s, s)
        b = jax.random.uniform(kb, (1, fan_out), jnp.float32, -s, s)
        return w, b

    keys = jax.random.split(key, 5 + hidden_layers)
    p = {}
    p["wx"], p["bx"] = lin(keys[0], input_size, emb_size)
    p["wc"], p["bc"] = lin(keys[1], condition_size, emb_size)
    p["wt"], p["bt"] = lin(keys[2], 1, emb_size)
    p["w0"], p["b0"] = lin(keys[3], 3 * emb_size, hidden_size)
    p["blocks"] = [lin(keys[4 + i], hidden_size, hidden_size) for i in range(hidden_layers)]
    p["wo"], p["bo"] = lin(keys[4 + hidden_layers], hidden_size, input_size)
    return p


def fold_params(params, block_dtype=jnp.bfloat16):
    """Exact algebraic fold of the 3 embedding Linears + first joint Linear, residual-weight
    stacking, and both padded / unpadded output projections. Host-side, done once."""
    emb = params["wx"].shape[1]
    w0 = params["w0"]
    w0x, w0c, w0t = w0[:emb], w0[emb:2 * emb], w0[2 * emb:3 * emb]

    # [x|c|t] @ concat(wx@w0x, wc@w0c, wt@w0t) + (bx@w0x + bc@w0c + bt@w0t + b0)
    w_fused = jnp.concatenate([params["wx"] @ w0x, params["wc"] @ w0c, params["wt"] @ w0t], 0)
    b_fused = params["bx"] @ w0x + params["bc"] @ w0c + params["bt"] @ w0t + params["b0"]

    wb_stack = jnp.stack([w for w, _ in params["blocks"]])        # (L, H, H)
    bb_stack = jnp.stack([b for _, b in params["blocks"]])        # (L, 1, H)

    wo, bo = params["wo"], params["bo"]
    out_dim = wo.shape[1]
    out_pad = _round_up(out_dim, 128)
    wo_pad = jnp.pad(wo, ((0, 0), (0, out_pad - out_dim)))
    bo_pad = jnp.pad(bo, ((0, 0), (0, out_pad - out_dim)))

    return dict(
        w_fused=w_fused.astype(jnp.float32),     # first matmul stays f32 (tiny K, t precision)
        b_fused=b_fused.astype(jnp.float32),
        wb_stack=wb_stack.astype(block_dtype),
        bb_stack=bb_stack.astype(jnp.float32),
        wo=wo.astype(block_dtype),               # unpadded output path (masked vst)
        bo=bo.astype(jnp.float32),
        wo_pad=wo_pad.astype(block_dtype),       # lane-dense padded output path (unmasked vst)
        bo_pad=bo_pad.astype(jnp.float32),
        out_dim=out_dim,
    )


# ----------------------------- forward wrapper --------------------------------

_V5E_VMEM_BUDGET = 14 << 20   # keep tiles under v5e's 16 MiB default scoped VMEM


def _vmem_estimate(tb, k_in, hidden, n_blk, out_cols, out_bytes):
    """Rough VMEM footprint: 2x double-buffered in/out tiles + live h/z temporaries + weights."""
    lane = 128
    in_tile = tb * _round_up(k_in, lane) * 4                     # f32 xct tile (lane-padded)
    out_tile = tb * _round_up(out_cols, lane) * out_bytes
    temps = 4 * tb * hidden * 4                                  # h / z / bf16 shadows in flight
    weights = (_round_up(k_in, 8) * hidden * 4 + hidden * 4
               + n_blk * hidden * hidden * 2 + n_blk * hidden * 4
               + hidden * _round_up(out_cols, lane) * 2 + _round_up(out_cols, lane) * 4)
    return 2 * in_tile + 2 * out_tile + temps + weights


def noise_network_forward(x, c, t, folded, *, batch_tile=2048,
                          lane_dense_out=True, out_store_dtype=jnp.bfloat16):
    B = x.shape[0]
    hidden = folded["w_fused"].shape[1]
    n_blk = folded["wb_stack"].shape[0]
    out_dim = folded["out_dim"]

    # Keep the concatenated [x|c|t] UNPADDED in HBM (k_in stays ~13): the VMEM tile is
    # lane-padded automatically and the MXU pads K internally, so HBM padding would only
    # inflate input read bytes ~10x for zero benefit.
    xct = jnp.concatenate([x, c, t], axis=-1).astype(jnp.float32)
    k_in = xct.shape[1]

    if lane_dense_out:
        # Padded, lane-dense output slab in bf16: unmasked vst, half the f32 writeback bytes.
        wo, bo = folded["wo_pad"], folded["bo_pad"]
        out_cols, out_dtype = wo.shape[1], out_store_dtype
    else:
        # Exact-width f32 output: masked vst.msk, but ~32x fewer HBM writeback bytes
        # (better on v5e/v6e's lower HBM bandwidth -- A/B measure).
        wo, bo = folded["wo"], folded["bo"]
        out_cols, out_dtype = out_dim, jnp.float32
    out_bytes = jnp.dtype(out_dtype).itemsize

    # Batch tile: large (amortizes ~0.35us per grid step), multiple of 16 (bf16 sublane
    # packing), capped so the estimated footprint stays under v5e's default scoped VMEM.
    tb = max(16, min(batch_tile, _round_up(B, 16)))
    while tb > 16 and _vmem_estimate(tb, k_in, hidden, n_blk, out_cols, out_bytes) > _V5E_VMEM_BUDGET:
        tb = max(16, _round_up(tb // 2, 16))
    # v7x megacore: keep >= 2 grid steps when the batch is big enough so the "parallel"
    # batch axis shards across both TensorCores instead of idling one.
    if B > 16 and _round_up(B, tb) // tb < 2:
        tb = max(16, _round_up((B + 1) // 2, 16))

    b_pad = _round_up(B, tb)
    if b_pad != B:
        xct = jnp.pad(xct, ((0, b_pad - B), (0, 0)))
    grid = (b_pad // tb,)

    vmem_limit = int(min(max(2 * _vmem_estimate(tb, k_in, hidden, n_blk, out_cols, out_bytes),
                             24 << 20), 60 << 20))   # <= 60 MiB keeps it v7x-safe

    def resident(shape):
        # Weights/biases stay VMEM-resident across the batch grid.
        return pl.BlockSpec(shape, lambda i, _n=len(shape): (0,) * _n)

    out = pl.pallas_call(
        noise_network_kernel,
        out_shape=jax.ShapeDtypeStruct((b_pad, out_cols), out_dtype),
        grid=grid,
        in_specs=[
            pl.BlockSpec((tb, k_in), lambda i: (i, 0)),      # [x|c|t] batch tile (f32)
            resident((k_in, hidden)),                        # fused first-layer weight (f32)
            resident((1, hidden)),                           # fused first-layer bias
            resident((n_blk, hidden, hidden)),               # stacked block weights (bf16)
            resident((n_blk, 1, hidden)),                    # stacked block biases
            resident((hidden, out_cols)),                    # output weight
            resident((1, out_cols)),                         # output bias
        ],
        out_specs=pl.BlockSpec((tb, out_cols), lambda i: (i, 0)),
        compiler_params=pltpu.CompilerParams(
            dimension_semantics=("parallel",),
            vmem_limit_bytes=vmem_limit),
    )(xct, folded["w_fused"], folded["b_fused"], folded["wb_stack"],
      folded["bb_stack"], wo, bo)

    return out[:B, :out_dim].astype(jnp.float32)


# ----------------------------- pure-JAX reference ------------------------------

def noise_network_reference(x, c, t, params):
    g = lambda v: 0.5 * v * (1.0 + jax.lax.erf(v / math.sqrt(2.0)))   # exact nn.GELU()
    x_emb = x @ params["wx"] + params["bx"]
    c_emb = c @ params["wc"] + params["bc"]
    t_emb = t @ params["wt"] + params["bt"]
    h = g(jnp.concatenate([x_emb, c_emb, t_emb], axis=-1) @ params["w0"] + params["b0"])
    for wb, bb in params["blocks"]:
        h = h + g(h @ wb + bb)
    return h @ params["wo"] + params["bo"]


# ----------------------------------- main --------------------------------------

if __name__ == "__main__":
    # Module-consistent small shapes (emb/hidden use the nn.Module defaults of 128).
    batch = 8
    input_size = 4
    condition_size = 8
    emb_size = 128
    hidden_size = 128
    hidden_layers = 3

    key = jax.random.PRNGKey(0)
    kx, kc, kt, kp = jax.random.split(key, 4)

    x = jax.random.normal(kx, (batch, input_size), jnp.float32)
    c = jax.random.normal(kc, (batch, condition_size), jnp.float32)
    t = jax.random.uniform(kt, (batch, 1), jnp.float32)   # per-sample timestep scalar

    params = init_params(kp, input_size, condition_size, emb_size,
                         hidden_size, hidden_layers)
    folded = fold_params(params)

    ref = noise_network_reference(x, c, t, params)

    # Default path: lane-dense padded bf16 output slab (unmasked vst).
    out = jax.block_until_ready(noise_network_forward(x, c, t, folded))
    assert out.shape == (batch, input_size)
    assert jnp.allclose(out, ref, atol=2e-2, rtol=2e-2), "mismatch (lane-dense path)"

    # A/B path for low-HBM-BW chips: exact-width f32 output (masked vst, ~32x fewer bytes).
    out2 = jax.block_until_ready(
        noise_network_forward(x, c, t, folded, lane_dense_out=False))
    assert out2.shape == (batch, input_size)
    assert jnp.allclose(out2, ref, atol=2e-2, rtol=2e-2), "mismatch (exact-width path)"

    print("KERNEL_OK")
</pallas_src>

<mosaic_0001>
module attributes {stable_mosaic.version = 11 : i64} {
  func.func @noise_network_kernel(%arg0: i32, %arg1: memref<16x13xf32, #tpu.memory_space<vmem>>, %arg2: memref<13x128xf32, #tpu.memory_space<vmem>>, %arg3: memref<1x128xf32, #tpu.memory_space<vmem>>, %arg4: memref<3x128x128xbf16, #tpu.memory_space<vmem>>, %arg5: memref<3x1x128xf32, #tpu.memory_space<vmem>>, %arg6: memref<128x128xbf16, #tpu.memory_space<vmem>>, %arg7: memref<1x128xf32, #tpu.memory_space<vmem>>, %arg8: memref<16x128xbf16, #tpu.memory_space<vmem>>) attributes {dimension_semantics = [#tpu.dimension_semantics<parallel>], iteration_bounds = array<i64: 1>, scalar_prefetch = 0 : i64, scratch_operands = 0 : i64, tpu.core_type = #tpu.core_type<tc>, window_params = [{transform_indices = @transform_0, window_bounds = array<i64: 16, 13>}, {pipeline_mode = #tpu.pipeline_mode<synchronous>, transform_indices = @transform_1, window_bounds = array<i64: 13, 128>}, {pipeline_mode = #tpu.pipeline_mode<synchronous>, transform_indices = @transform_2, window_bounds = array<i64: 1, 128>}, {pipeline_mode = #tpu.pipeline_mode<synchronous>, transform_indices = @transform_3, window_bounds = array<i64: 3, 128, 128>}, {pipeline_mode = #tpu.pipeline_mode<synchronous>, transform_indices = @transform_4, window_bounds = array<i64: 3, 1, 128>}, {pipeline_mode = #tpu.pipeline_mode<synchronous>, transform_indices = @transform_5, window_bounds = array<i64: 128, 128>}, {pipeline_mode = #tpu.pipeline_mode<synchronous>, transform_indices = @transform_6, window_bounds = array<i64: 1, 128>}, {transform_indices = @transform_7, window_bounds = array<i64: 16, 128>}]} {
    %c0 = arith.constant 0 : index
    %c0_0 = arith.constant 0 : index
    %0 = vector.load %arg1[%c0, %c0_0] : memref<16x13xf32, #tpu.memory_space<vmem>>, vector<16x13xf32>
    %c0_1 = arith.constant 0 : index
    %c0_2 = arith.constant 0 : index
    %1 = vector.load %arg2[%c0_1, %c0_2] : memref<13x128xf32, #tpu.memory_space<vmem>>, vector<13x128xf32>
    %cst = arith.constant dense<0.000000e+00> : vector<16x128xf32>
    %2 = tpu.matmul %0, %1, %cst {dimension_numbers = #tpu.dot_dimension_numbers<[1], [0], [0], [1], [0, 0, 1, 1], [], []>} : vector<16x13xf32>, vector<13x128xf32>, vector<16x128xf32> -> vector<16x128xf32>
    %c0_3 = arith.constant 0 : index
    %c0_4 = arith.constant 0 : index
    %3 = vector.load %arg3[%c0_3, %c0_4] : memref<1x128xf32, #tpu.memory_space<vmem>>, vector<1x128xf32>
    %4 = vector.broadcast %3 : vector<1x128xf32> to vector<16x128xf32>
    %5 = arith.addf %2, %4 : vector<16x128xf32>
    %6 = arith.mulf %5, %5 : vector<16x128xf32>
    %7 = arith.mulf %5, %6 : vector<16x128xf32>
    %cst_5 = arith.constant 4.471500e-02 : f32
    %8 = vector.broadcast %cst_5 : f32 to vector<16x128xf32>
    %9 = arith.mulf %8, %7 : vector<16x128xf32>
    %10 = arith.addf %5, %9 : vector<16x128xf32>
    %cst_6 = arith.constant 0.797884583 : f32
    %11 = vector.broadcast %cst_6 : f32 to vector<16x128xf32>
    %12 = arith.mulf %11, %10 : vector<16x128xf32>
    %13 = math.tanh %12 : vector<16x128xf32>
    %cst_7 = arith.constant 1.000000e+00 : f32
    %14 = vector.broadcast %cst_7 : f32 to vector<16x128xf32>
    %15 = arith.addf %14, %13 : vector<16x128xf32>
    %cst_8 = arith.constant 5.000000e-01 : f32
    %16 = vector.broadcast %cst_8 : f32 to vector<16x128xf32>
    %17 = arith.mulf %16, %15 : vector<16x128xf32>
    %18 = arith.mulf %5, %17 : vector<16x128xf32>
    %19 = arith.truncf %18 : vector<16x128xf32> to vector<16x128xbf16>
    %c0_9 = arith.constant 0 : index
    %c0_10 = arith.constant 0 : index
    %c0_11 = arith.constant 0 : index
    %20 = vector.load %arg4[%c0_9, %c0_10, %c0_11] : memref<3x128x128xbf16, #tpu.memory_space<vmem>>, vector<1x128x128xbf16>
    %21 = vector.shape_cast %20 : vector<1x128x128xbf16> to vector<128x128xbf16>
    %cst_12 = arith.constant dense<0.000000e+00> : vector<16x128xf32>
    %22 = tpu.matmul %19, %21, %cst_12 {dimension_numbers = #tpu.dot_dimension_numbers<[1], [0], [0], [1], [0, 0, 1, 1], [], []>} : vector<16x128xbf16>, vector<128x128xbf16>, vector<16x128xf32> -> vector<16x128xf32>
    %c0_13 = arith.constant 0 : index
    %c0_14 = arith.constant 0 : index
    %c0_15 = arith.constant 0 : index
    %23 = vector.load %arg5[%c0_13, %c0_14, %c0_15] : memref<3x1x128xf32, #tpu.memory_space<vmem>>, vector<1x1x128xf32>
    %24 = vector.shape_cast %23 : vector<1x1x128xf32> to vector<1x128xf32>
    %25 = vector.broadcast %24 : vector<1x128xf32> to vector<16x128xf32>
    %26 = arith.addf %22, %25 : vector<16x128xf32>
    %27 = arith.mulf %26, %26 : vector<16x128xf32>
    %28 = arith.mulf %26, %27 : vector<16x128xf32>
    %cst_16 = arith.constant 4.471500e-02 : f32
    %29 = vector.broadcast %cst_16 : f32 to vector<16x128xf32>
    %30 = arith.mulf %29, %28 : vector<16x128xf32>
    %31 = arith.addf %26, %30 : vector<16x128xf32>
    %cst_17 = arith.constant 0.797884583 : f32
    %32 = vector.broadcast %cst_17 : f32 to vector<16x128xf32>
    %33 = arith.mulf %32, %31 : vector<16x128xf32>
    %34 = math.tanh %33 : vector<16x128xf32>
    %cst_18 = arith.constant 1.000000e+00 : f32
    %35 = vector.broadcast %cst_18 : f32 to vector<16x128xf32>
    %36 = arith.addf %35, %34 : vector<16x128xf32>
    %cst_19 = arith.constant 5.000000e-01 : f32
    %37 = vector.broadcast %cst_19 : f32 to vector<16x128xf32>
    %38 = arith.mulf %37, %36 : vector<16x128xf32>
    %39 = arith.mulf %26, %38 : vector<16x128xf32>
    %40 = arith.addf %18, %39 : vector<16x128xf32>
    %41 = arith.truncf %40 : vector<16x128xf32> to vector<16x128xbf16>
    %c1 = arith.constant 1 : index
    %c0_20 = arith.constant 0 : index
    %c0_21 = arith.constant 0 : index
    %42 = vector.load %arg4[%c1, %c0_20, %c0_21] : memref<3x128x128xbf16, #tpu.memory_space<vmem>>, vector<1x128x128xbf16>
    %43 = vector.shape_cast %42 : vector<1x128x128xbf16> to vector<128x128xbf16>
    %cst_22 = arith.constant dense<0.000000e+00> : vector<16x128xf32>
    %44 = tpu.matmul %41, %43, %cst_22 {dimension_numbers = #tpu.dot_dimension_numbers<[1], [0], [0], [1], [0, 0, 1, 1], [], []>} : vector<16x128xbf16>, vector<128x128xbf16>, vector<16x128xf32> -> vector<16x128xf32>
    %c1_23 = arith.constant 1 : index
    %c0_24 = arith.constant 0 : index
    %c0_25 = arith.constant 0 : index
    %45 = vector.load %arg5[%c1_23, %c0_24, %c0_25] : memref<3x1x128xf32, #tpu.memory_space<vmem>>, vector<1x1x128xf32>
    %46 = vector.shape_cast %45 : vector<1x1x128xf32> to vector<1x128xf32>
    %47 = vector.broadcast %46 : vector<1x128xf32> to vector<16x128xf32>
    %48 = arith.addf %44, %47 : vector<16x128xf32>
    %49 = arith.mulf %48, %48 : vector<16x128xf32>
    %50 = arith.mulf %48, %49 : vector<16x128xf32>
    %cst_26 = arith.constant 4.471500e-02 : f32
    %51 = vector.broadcast %cst_26 : f32 to vector<16x128xf32>
    %52 = arith.mulf %51, %50 : vector<16x128xf32>
    %53 = arith.addf %48, %52 : vector<16x128xf32>
    %cst_27 = arith.constant 0.797884583 : f32
    %54 = vector.broadcast %cst_27 : f32 to vector<16x128xf32>
    %55 = arith.mulf %54, %53 : vector<16x128xf32>
    %56 = math.tanh %55 : vector<16x128xf32>
    %cst_28 = arith.constant 1.000000e+00 : f32
    %57 = vector.broadcast %cst_28 : f32 to vector<16x128xf32>
    %58 = arith.addf %57, %56 : vector<16x128xf32>
    %cst_29 = arith.constant 5.000000e-01 : f32
    %59 = vector.broadcast %cst_29 : f32 to vector<16x128xf32>
    %60 = arith.mulf %59, %58 : vector<16x128xf32>
    %61 = arith.mulf %48, %60 : vector<16x128xf32>
    %62 = arith.addf %40, %61 : vector<16x128xf32>
    %63 = arith.truncf %62 : vector<16x128xf32> to vector<16x128xbf16>
    %c2 = arith.constant 2 : index
    %c0_30 = arith.constant 0 : index
    %c0_31 = arith.constant 0 : index
    %64 = vector.load %arg4[%c2, %c0_30, %c0_31] : memref<3x128x128xbf16, #tpu.memory_space<vmem>>, vector<1x128x128xbf16>
    %65 = vector.shape_cast %64 : vector<1x128x128xbf16> to vector<128x128xbf16>
    %cst_32 = arith.constant dense<0.000000e+00> : vector<16x128xf32>
    %66 = tpu.matmul %63, %65, %cst_32 {dimension_numbers = #tpu.dot_dimension_numbers<[1], [0], [0], [1], [0, 0, 1, 1], [], []>} : vector<16x128xbf16>, vector<128x128xbf16>, vector<16x128xf32> -> vector<16x128xf32>
    %c2_33 = arith.constant 2 : index
    %c0_34 = arith.constant 0 : index
    %c0_35 = arith.constant 0 : index
    %67 = vector.load %arg5[%c2_33, %c0_34, %c0_35] : memref<3x1x128xf32, #tpu.memory_space<vmem>>, vector<1x1x128xf32>
    %68 = vector.shape_cast %67 : vector<1x1x128xf32> to vector<1x128xf32>
    %69 = vector.broadcast %68 : vector<1x128xf32> to vector<16x128xf32>
    %70 = arith.addf %66, %69 : vector<16x128xf32>
    %71 = arith.mulf %70, %70 : vector<16x128xf32>
    %72 = arith.mulf %70, %71 : vector<16x128xf32>
    %cst_36 = arith.constant 4.471500e-02 : f32
    %73 = vector.broadcast %cst_36 : f32 to vector<16x128xf32>
    %74 = arith.mulf %73, %72 : vector<16x128xf32>
    %75 = arith.addf %70, %74 : vector<16x128xf32>
    %cst_37 = arith.constant 0.797884583 : f32
    %76 = vector.broadcast %cst_37 : f32 to vector<16x128xf32>
    %77 = arith.mulf %76, %75 : vector<16x128xf32>
    %78 = math.tanh %77 : vector<16x128xf32>
    %cst_38 = arith.constant 1.000000e+00 : f32
    %79 = vector.broadcast %cst_38 : f32 to vector<16x128xf32>
    %80 = arith.addf %79, %78 : vector<16x128xf32>
    %cst_39 = arith.constant 5.000000e-01 : f32
    %81 = vector.broadcast %cst_39 : f32 to vector<16x128xf32>
    %82 = arith.mulf %81, %80 : vector<16x128xf32>
    %83 = arith.mulf %70, %82 : vector<16x128xf32>
    %84 = arith.addf %62, %83 : vector<16x128xf32>
    %85 = arith.truncf %84 : vector<16x128xf32> to vector<16x128xbf16>
    %c0_40 = arith.constant 0 : index
    %c0_41 = arith.constant 0 : index
    %86 = vector.load %arg6[%c0_40, %c0_41] : memref<128x128xbf16, #tpu.memory_space<vmem>>, vector<128x128xbf16>
    %cst_42 = arith.constant dense<0.000000e+00> : vector<16x128xf32>
    %87 = tpu.matmul %85, %86, %cst_42 {dimension_numbers = #tpu.dot_dimension_numbers<[1], [0], [0], [1], [0, 0, 1, 1], [], []>} : vector<16x128xbf16>, vector<128x128xbf16>, vector<16x128xf32> -> vector<16x128xf32>
    %c0_43 = arith.constant 0 : index
    %c0_44 = arith.constant 0 : index
    %88 = vector.load %arg7[%c0_43, %c0_44] : memref<1x128xf32, #tpu.memory_space<vmem>>, vector<1x128xf32>
    %89 = vector.broadcast %88 : vector<1x128xf32> to vector<16x128xf32>
    %90 = arith.addf %87, %89 : vector<16x128xf32>
    %91 = arith.truncf %90 : vector<16x128xf32> to vector<16x128xbf16>
    %c0_45 = arith.constant 0 : index
    %c0_46 = arith.constant 0 : index
    %92 = vector.load %arg8[%c0_45, %c0_46] : memref<16x128xbf16, #tpu.memory_space<vmem>>, vector<16x128xbf16>
    tpu.vector_store %arg8[%c0_45, %c0_46], %91 {strides = array<i32>} : memref<16x128xbf16, #tpu.memory_space<vmem>>, vector<16x128xbf16>,
    return
  }
  func.func @transform_0(%arg0: i32) -> (i32, i32) {
    %c0_i32 = arith.constant 0 : i32
    %c0_i32_0 = arith.constant 0 : i32
    return %arg0, %c0_i32 : i32, i32
  }
  func.func @transform_1(%arg0: i32) -> (i32, i32) {
    %c0_i32 = arith.constant 0 : i32
    %c0_i32_0 = arith.constant 0 : i32
    %c0_i32_1 = arith.constant 0 : i32
    return %c0_i32, %c0_i32_0 : i32, i32
  }
  func.func @transform_2(%arg0: i32) -> (i32, i32) {
    %c0_i32 = arith.constant 0 : i32
    %c0_i32_0 = arith.constant 0 : i32
    %c0_i32_1 = arith.constant 0 : i32
    return %c0_i32, %c0_i32_0 : i32, i32
  }
  func.func @transform_3(%arg0: i32) -> (i32, i32, i32) {
    %c0_i32 = arith.constant 0 : i32
    %c0_i32_0 = arith.constant 0 : i32
    %c0_i32_1 = arith.constant 0 : i32
    %c0_i32_2 = arith.constant 0 : i32
    return %c0_i32, %c0_i32_0, %c0_i32_1 : i32, i32, i32
  }
  func.func @transform_4(%arg0: i32) -> (i32, i32, i32) {
    %c0_i32 = arith.constant 0 : i32
    %c0_i32_0 = arith.constant 0 : i32
    %c0_i32_1 = arith.constant 0 : i32
    %c0_i32_2 = arith.constant 0 : i32
    return %c0_i32, %c0_i32_0, %c0_i32_1 : i32, i32, i32
  }
  func.func @transform_5(%arg0: i32) -> (i32, i32) {
    %c0_i32 = arith.constant 0 : i32
    %c0_i32_0 = arith.constant 0 : i32
    %c0_i32_1 = arith.constant 0 : i32
    return %c0_i32, %c0_i32_0 : i32, i32
  }
  func.func @transform_6(%arg0: i32) -> (i32, i32) {
    %c0_i32 = arith.constant 0 : i32
    %c0_i32_0 = arith.constant 0 : i32
    %c0_i32_1 = arith.constant 0 : i32
    return %c0_i32, %c0_i32_0 : i32, i32
  }
  func.func @transform_7(%arg0: i32) -> (i32, i32) {
    %c0_i32 = arith.constant 0 : i32
    %c0_i32_0 = arith.constant 0 : i32
    return %arg0, %c0_i32 : i32, i32
  }
}

</mosaic_0001>

<bundles_post_ra>
// kernel: tpu_custom_call.1
= control target key start
LH: loop header
LB: loop body
LE: loop exit
PB: predicated region body
PF: predicated region fallthrough
CT: control target
= control target key end

     0   :  { %12 = vsyncpa [#allocation3], 0  ;;  %s1026_s0 = inlined_call_operand.hbm [shape: f32[16,13], index: 0, kind: input, shape index: {}]   ;;  %s1027_s1 = inlined_call_operand.hbm [shape: f32[13,128], index: 1, kind: input, shape index: {}]   ;;  %s1028_s2 = inlined_call_operand.hbm [shape: f32[1,128], index: 2, kind: input, shape index: {}]   ;;  %s1029_s3 = inlined_call_operand.hbm [shape: bf16[3,128,128], index: 3, kind: input, shape index: {}]   ;;  %s1030_s4 = inlined_call_operand.vmem [shape: f32[3,1,128], index: 4, kind: input, shape index: {}]   ;;  %s1031_s5 = inlined_call_operand.hbm [shape: bf16[128,128], index: 5, kind: input, shape index: {}]   ;;  %s1032_s6 = inlined_call_operand.vmem [shape: f32[1,128], index: 6, kind: input, shape index: {}]   ;;  %s1033_s7 = inlined_call_operand.hbm [shape: bf16[16,128], index: 7, kind: output, shape index: {}]  }
   0x1   :  { %13 = vsyncpa [#allocation6], 0 }
   0x2   :  { %14 = vsyncpa [#allocation9], 0 }
   0x3   :  { %15 = vsyncpa [#allocation4], 0  ;;  %s33_s26 = sshll.u32 %s1027_s1, 4  ;;  %s937_s27 = smov [#allocation5]   ;;  %s34_s26 = int_to_ptr.hbm [resolvable:$true] %s33_s26 }
   0x4   :  { %s35_s28 = sshll.u32 %s937_s27, 4  ;;  %s57_s8 = sshll.u32 %s1029_s3, 4  ;;  %s36_s28 = int_to_ptr.vmem [resolvable:$true] %s35_s28  ;;  %s58_s8 = int_to_ptr.hbm [resolvable:$true] %s57_s8 }
   0x5   :  { %s938_s9 = smov 128   ;;  %s939_s10 = smov 8  }
   0x6   :  { %41 = dma.hbm_to_vmem [thread:$0]  %s34_s26, 256, %s36_s28, [#allocation6], %s938_s9, %s938_s9, %s939_s10  }
   0x7   :  { %s940_s11 = smov [#allocation8]   ;;  %s941_s13 = smov 64  }
   0x8   :  { %s59_s12 = sshll.u32 %s940_s11, 4  ;;  %s942_s14 = smov 4   ;;  %s60_s12 = int_to_ptr.vmem [resolvable:$true] %s59_s12 }
   0x9   :  { %65 = dma.hbm_to_vmem [thread:$0]  %s58_s8, 3072, %s60_s12, [#allocation9], %s941_s13, %s941_s13, %s942_s14  }
   0xa   :  { %s20_s16 = sshll.u32 %s1026_s0, 4  ;;  %s943_s17 = smov [#allocation2]   ;;  %s21_s16 = int_to_ptr.hbm [resolvable:$true] %s20_s16 }
   0xb   :  { %s22_s3 = sshll.u32 %s943_s17, 4  ;;  %s47_s20 = sshll.u32 %s1028_s2, 4  ;;  %s23_s3 = int_to_ptr.vmem [resolvable:$true] %s22_s3  ;;  %s48_s20 = int_to_ptr.hbm [resolvable:$true] %s47_s20 }
   0xc   :  { %28 = dma.hbm_to_vmem [thread:$0]  %s21_s16, 256, %s23_s3, [#allocation3], %s938_s9, %s938_s9, %s939_s10  }
   0xd   :  { %s944_s21 = smov [#allocation7]   ;;  %s72_s25 = sshll.u32 %s1031_s5, 4  ;;  %s73_s25 = int_to_ptr.hbm [resolvable:$true] %s72_s25 }
   0xe   :  { %s49_s22 = sshll.u32 %s944_s21, 4  ;;  %s945_s0 = smov [#allocation10]   ;;  %s50_s22 = int_to_ptr.vmem [resolvable:$true] %s49_s22 }
   0xf   :  { %52 = dma.hbm_to_vmem [thread:$0]  %s48_s20, 16, %s50_s22, [#allocation6]  }
  0x10   :  { %s74_s26 = sshll.u32 %s945_s0, 4  ;;  %s75_s26 = int_to_ptr.vmem [resolvable:$true] %s74_s26 }
  0x11   :  { %80 = dma.hbm_to_vmem [thread:$0]  %s73_s25, 1024, %s75_s26, [#allocation9], %s941_s13, %s941_s13, %s942_s14  }
  0x12   :  { %929 = dma.done.wait [#allocation3], 256  }
  0x13   :  { %930 = vsyncadd [#allocation3], 4294967040 }
  0x14   :  { %931 = dma.done.wait [#allocation6], 272  }
  0x15   :  { %932 = vsyncadd [#allocation6], 4294967024 }
  0x16   :  { %933 = dma.done.wait [#allocation9], 4096  }
  0x17   :  { %934 = vsyncadd [#allocation9], 4294963200  ;;  %vm118_vm0 = vcmask 1044480   ;;  %v106_v0 = vld [vmem:[#allocation5 + $0x8] sm:$0x1f]  ;;  %v105_v1 = vld [vmem:[#allocation5] sm:$0xff] }
  0x18   :  { %584 = vmatpush.msk.msra.mxu0 %vm118_vm0, %v106_v0  ;;  %v103_v2 = vld [vmem:[#allocation2] sm:$0xff]  ;;  %vm111_vm1 = vcmask 105472   ;;  %v104_v3 = vld [vmem:[#allocation2 + $0x8] sm:$0xff]  ;;  %v723_v5 = vld [vmem:[#allocation8 + $0x30] sm:$0xff]  ;;  %s946_s9 = smov [#allocation11]   ;;  %s569_s1 = sshll.u32 %s1033_s7, 4  ;;  %s570_s1 = int_to_ptr.hbm [resolvable:$true] %s569_s1 }
  0x19   :  { %v724_v4 = vld [vmem:[#allocation8 + $0x38] sm:$0xff]  ;;  %v722_v6 = vld [vmem:[#allocation8 + $0x28] sm:$0xff]  ;;  %v721_v7 = vld [vmem:[#allocation8 + $0x20] sm:$0xff]  ;;  %s567_s10 = sshll.u32 %s946_s9, 4  ;;  %s568_s10 = int_to_ptr.vmem [resolvable:$true] %s567_s10 }
  0x1a   :  { %137 = vmatpush.msra.mxu0 %v105_v1  ;;  %232 = vmatpush.bf16.msra.mxu1 %v724_v4  ;;  %v720_v8 = vld [vmem:[#allocation8 + $0x18] sm:$0xff]  ;;  %v719_v9 = vld [vmem:[#allocation8 + $0x10] sm:$0xff]  ;;  %v718_v10 = vld [vmem:[#allocation8 + $0x8] sm:$0xff] }
  0x1b   :  { %585 = vmatmul.msk.f32.vlgmr.msra.gmra.mxu0 %vm111_vm1, %v103_v2  ;;  %v764_v11 = vld [vmem:[#allocation7] ss:$0 sm:$0xff]  ;;  %v717_v12 = vld [vmem:[#allocation8] sm:$0xff]  ;;  %v731_v37 = vld [vmem:[#allocation8 + $0x70] sm:$0xff] }
  0x1c   :  { %v732_v36 = vld [vmem:[#allocation8 + $0x78] sm:$0xff]  ;;  %v730_v38 = vld [vmem:[#allocation8 + $0x68] sm:$0xff]  ;;  %v729_v39 = vld [vmem:[#allocation8 + $0x60] sm:$0xff] }
  0x1d   :  { %337 = vmatpush.bf16.msra.mxu2 %v732_v36  ;;  %v728_v40 = vld [vmem:[#allocation8 + $0x58] sm:$0xff]  ;;  %v727_v41 = vld [vmem:[#allocation8 + $0x50] sm:$0xff]  ;;  %v726_v42 = vld [vmem:[#allocation8 + $0x48] sm:$0xff] }
  0x1e   :  { %233 = vmatpush.bf16.msra.mxu1 %v723_v5  ;;  %v765_v43 = vld [vmem:[%s1030_s4] ss:$0 sm:$0xff]  ;;  %v725_v44 = vld [vmem:[#allocation8 + $0x40] sm:$0xff] }
  0x21   :  { %338 = vmatpush.bf16.msra.mxu2 %v731_v37 }
  0x22   :  { %234 = vmatpush.bf16.msra.mxu1 %v722_v6  ;;  %v740_v6 = vld [vmem:[#allocation8 + $0xb8] sm:$0xff] }
  0x23   :  { %586 = vmatmul.msk.f32.gmra.mxu0 %vm111_vm1, %v104_v3  ;;  %442 = vmatpush.bf16.msra.mxu3 %v740_v6 }
  0x25   :  { %339 = vmatpush.bf16.msra.mxu2 %v730_v38 }
  0x26   :  { %235 = vmatpush.bf16.msra.mxu1 %v721_v7  ;;  %v739_v7 = vld [vmem:[#allocation8 + $0xb0] sm:$0xff] }
  0x27   :  { %443 = vmatpush.bf16.msra.mxu3 %v739_v7 }
  0x29   :  { %340 = vmatpush.bf16.msra.mxu2 %v729_v39 }
  0x2a   :  { %236 = vmatpush.bf16.msra.mxu1 %v720_v8  ;;  %v738_v8 = vld [vmem:[#allocation8 + $0xa8] sm:$0xff] }
  0x2b   :  { %444 = vmatpush.bf16.msra.mxu3 %v738_v8 }
  0x2d   :  { %341 = vmatpush.bf16.msra.mxu2 %v728_v40  ;;  %v748_v40 = vld [vmem:[#allocation10 + $0x38] sm:$0xff] }
  0x2e   :  { %237 = vmatpush.bf16.msra.mxu1 %v719_v9  ;;  %v737_v9 = vld [vmem:[#allocation8 + $0xa0] sm:$0xff]  ;;  %545 = vmatpush.bf16.msrb.mxu0 %v748_v40 }
  0x2f   :  { %445 = vmatpush.bf16.msra.mxu3 %v737_v9 }
  0x31   :  { %342 = vmatpush.bf16.msra.mxu2 %v727_v41  ;;  %v747_v41 = vld [vmem:[#allocation10 + $0x30] sm:$0xff] }
  0x32   :  { %238 = vmatpush.bf16.msra.mxu1 %v718_v10  ;;  %v736_v10 = vld [vmem:[#allocation8 + $0x98] sm:$0xff]  ;;  %546 = vmatpush.bf16.msrb.mxu0 %v747_v41 }
  0x33   :  { %446 = vmatpush.bf16.msra.mxu3 %v736_v10 }
  0x35   :  { %343 = vmatpush.bf16.msra.mxu2 %v726_v42  ;;  %v746_v42 = vld [vmem:[#allocation10 + $0x28] sm:$0xff] }
  0x36   :  { %239 = vmatpush.bf16.msra.mxu1 %v717_v12  ;;  %v734_v12 = vld [vmem:[#allocation8 + $0x88] sm:$0xff]  ;;  %547 = vmatpush.bf16.msrb.mxu0 %v746_v42 }
  0x39   :  { %344 = vmatpush.bf16.msra.mxu2 %v725_v44  ;;  %v744_v44 = vld [vmem:[#allocation10 + $0x18] sm:$0xff] }
  0x98   :  { %v139_v13 = vpop.f32.mrf.mxu0 }
  0x99   :  { %v140_v14 = vadd.f32 %v764_v11, %v139_v13  ;;  %v766_v13 = vld [vmem:[%s1030_s4 + $0x1] ss:$0 sm:$0xff] }
  0x9b   :  { %v145_v15 = vmul.f32 %v140_v14, %v140_v14 }
  0x9d   :  { %v147_v16 = vmul.f32 %v145_v15, %v140_v14 }
  0x9f   :  { %v149_v17 = vmul.f32 0.044715, %v147_v16 }
  0xa0   :  { %v142_v18 = vpop.f32.mrf.mxu0 }
  0xa1   :  { %v151_v19 = vadd.f32 %v149_v17, %v140_v14  ;;  %v143_v20 = vadd.f32 %v764_v11, %v142_v18  ;;  %v735_v11 = vld [vmem:[#allocation8 + $0x90] sm:$0xff] }
  0xa2   :  { %447 = vmatpush.bf16.msra.mxu3 %v735_v11  ;;  %v768_v11 = vld [vmem:[%s1032_s6] ss:$0 sm:$0xff] }
  0xa3   :  { %v146_v21 = vmul.f32 %v143_v20, %v143_v20  ;;  %v153_v22 = vmul.f32 0.7978846, %v151_v19 }
  0xa5   :  { %v148_v23 = vmul.f32 %v146_v21, %v143_v20  ;;  %769 = vtanh.f32 %v153_v22 }
  0xa6   :  { %448 = vmatpush.bf16.msra.mxu3 %v734_v12 }
  0xa7   :  { %v150_v24 = vmul.f32 0.044715, %v148_v23 }
  0xa9   :  { %v152_v25 = vadd.f32 %v150_v24, %v143_v20 }
  0xab   :  { %v154_v26 = vmul.f32 0.7978846, %v152_v25  ;;  %v770_v27 = vpop.eup %769 }
  0xac   :  { %v157_v28 = vadd.f32 1.0, %v770_v27 }
  0xad   :  { %771 = vtanh.f32 %v154_v26 }
  0xae   :  { %v159_v31 = vmul.f32 0.5, %v157_v28 }
  0xb0   :  { %v161_v33 = vmul.f32 %v159_v31, %v140_v14  ;;  %v733_v14 = vld [vmem:[#allocation8 + $0x80] sm:$0xff] }
  0xb1   :  { %449 = vmatpush.bf16.msra.mxu3 %v733_v14 }
  0xb3   :  { %v772_v29 = vpop.eup %771 }
  0xb4   :  { %v158_v30 = vadd.f32 1.0, %v772_v29 }
  0xb6   :  { %v160_v32 = vmul.f32 0.5, %v158_v30 }
  0xb8   :  { %v162_v34 = vmul.f32 %v160_v32, %v143_v20 }
  0xba   :  { %v163_v35 = vpack.c.bf16 %v162_v34, %v161_v33 }
  0xbc   :  { %240 = vmatmul.bf16.vlgmr.msra.gmra.mxu1 %v163_v35 }
 0x139   :  { %v241_v45 = vpop.f32.mrf.mxu1 }
 0x13a   :  { %v242_v46 = vadd.f32 %v765_v43, %v241_v45  ;;  %v743_v45 = vld [vmem:[#allocation10 + $0x10] sm:$0xff] }
 0x13c   :  { %v246_v47 = vmul.f32 %v242_v46, %v242_v46 }
 0x13e   :  { %v248_v48 = vmul.f32 %v246_v47, %v242_v46  ;;  %v767_v47 = vld [vmem:[%s1030_s4 + $0x2] ss:$0 sm:$0xff] }
 0x140   :  { %v250_v49 = vmul.f32 0.044715, %v248_v48  ;;  %v741_v48 = vld [vmem:[#allocation10] sm:$0xff] }
 0x141   :  { %v243_v50 = vpop.f32.mrf.mxu1 }
 0x142   :  { %v252_v51 = vadd.f32 %v250_v49, %v242_v46  ;;  %v244_v52 = vadd.f32 %v765_v43, %v243_v50  ;;  %v745_v43 = vld [vmem:[#allocation10 + $0x20] sm:$0xff] }
 0x143   :  { %548 = vmatpush.bf16.msrb.mxu0 %v745_v43 }
 0x144   :  { %v254_v53 = vmul.f32 0.7978846, %v252_v51  ;;  %v247_v54 = vmul.f32 %v244_v52, %v244_v52 }
 0x146   :  { %773 = vtanh.f32 %v254_v53  ;;  %v249_v55 = vmul.f32 %v247_v54, %v244_v52 }
 0x147   :  { %549 = vmatpush.bf16.msrb.mxu0 %v744_v44 }
 0x148   :  { %v251_v56 = vmul.f32 0.044715, %v249_v55 }
 0x14a   :  { %v253_v57 = vadd.f32 %v251_v56, %v244_v52 }
 0x14b   :  { %550 = vmatpush.bf16.msrb.mxu0 %v743_v45 }
 0x14c   :  { %v774_v58 = vpop.eup %773  ;;  %v255_v59 = vmul.f32 0.7978846, %v253_v57 }
 0x14d   :  { %v258_v60 = vadd.f32 1.0, %v774_v58 }
 0x14e   :  { %775 = vtanh.f32 %v255_v59 }
 0x14f   :  { %v260_v61 = vmul.f32 0.5, %v258_v60 }
 0x151   :  { %v262_v1 = vmul.f32 %v260_v61, %v242_v46  ;;  %v742_v46 = vld [vmem:[#allocation10 + $0x8] sm:$0xff] }
 0x152   :  { %551 = vmatpush.bf16.msrb.mxu0 %v742_v46 }
 0x153   :  { %v264_v3 = vadd.f32 %v262_v1, %v161_v33 }
 0x154   :  { %v776_v62 = vpop.eup %775 }
 0x155   :  { %v259_v63 = vadd.f32 1.0, %v776_v62 }
 0x156   :  { %552 = vmatpush.bf16.msrb.mxu0 %v741_v48 }
 0x157   :  { %v261_v0 = vmul.f32 0.5, %v259_v63 }
 0x159   :  { %v263_v2 = vmul.f32 %v261_v0, %v244_v52 }
 0x15b   :  { %v265_v4 = vadd.f32 %v263_v2, %v162_v34 }
 0x15d   :  { %v266_v5 = vpack.c.bf16 %v265_v4, %v264_v3 }
 0x15f   :  { %345 = vmatmul.bf16.vlgmr.msra.gmra.mxu2 %v266_v5 }
 0x1e2   :  { %v346_v15 = vpop.f32.mrf.mxu2 }
 0x1e3   :  { %v347_v16 = vadd.f32 %v766_v13, %v346_v15 }
 0x1e5   :  { %v351_v17 = vmul.f32 %v347_v16, %v347_v16 }
 0x1e7   :  { %v353_v18 = vmul.f32 %v351_v17, %v347_v16 }
 0x1e9   :  { %v355_v19 = vmul.f32 0.044715, %v353_v18 }
 0x1ea   :  { %v348_v20 = vpop.f32.mrf.mxu2 }
 0x1eb   :  { %v357_v21 = vadd.f32 %v355_v19, %v347_v16  ;;  %v349_v22 = vadd.f32 %v766_v13, %v348_v20 }
 0x1ed   :  { %v359_v23 = vmul.f32 0.7978846, %v357_v21  ;;  %v352_v24 = vmul.f32 %v349_v22, %v349_v22 }
 0x1ef   :  { %777 = vtanh.f32 %v359_v23  ;;  %v354_v25 = vmul.f32 %v352_v24, %v349_v22 }
 0x1f1   :  { %v356_v26 = vmul.f32 0.044715, %v354_v25 }
 0x1f3   :  { %v358_v27 = vadd.f32 %v356_v26, %v349_v22 }
 0x1f5   :  { %v778_v28 = vpop.eup %777  ;;  %v360_v29 = vmul.f32 0.7978846, %v358_v27 }
 0x1f6   :  { %v363_v30 = vadd.f32 1.0, %v778_v28 }
 0x1f7   :  { %779 = vtanh.f32 %v360_v29 }
 0x1f8   :  { %v365_v31 = vmul.f32 0.5, %v363_v30 }
 0x1fa   :  { %v367_v35 = vmul.f32 %v365_v31, %v347_v16 }
 0x1fc   :  { %v369_v37 = vadd.f32 %v367_v35, %v264_v3 }
 0x1fd   :  { %v780_v32 = vpop.eup %779 }
 0x1fe   :  { %v364_v33 = vadd.f32 1.0, %v780_v32 }
 0x200   :  { %v366_v34 = vmul.f32 0.5, %v364_v33 }
 0x202   :  { %v368_v36 = vmul.f32 %v366_v34, %v349_v22 }
 0x204   :  { %v370_v38 = vadd.f32 %v368_v36, %v265_v4 }
 0x206   :  { %v371_v39 = vpack.c.bf16 %v370_v38, %v369_v37 }
 0x208   :  { %450 = vmatmul.bf16.vlgmr.msra.gmra.mxu3 %v371_v39 }
 0x28b   :  { %v451_v49 = vpop.f32.mrf.mxu3 }
 0x28c   :  { %v452_v50 = vadd.f32 %v767_v47, %v451_v49 }
 0x28e   :  { %v456_v51 = vmul.f32 %v452_v50, %v452_v50 }
 0x290   :  { %v458_v52 = vmul.f32 %v456_v51, %v452_v50 }
 0x292   :  { %v460_v53 = vmul.f32 0.044715, %v458_v52 }
 0x293   :  { %v453_v54 = vpop.f32.mrf.mxu3 }
 0x294   :  { %v462_v55 = vadd.f32 %v460_v53, %v452_v50  ;;  %v454_v56 = vadd.f32 %v767_v47, %v453_v54 }
 0x296   :  { %v464_v57 = vmul.f32 0.7978846, %v462_v55  ;;  %v457_v58 = vmul.f32 %v454_v56, %v454_v56 }
 0x298   :  { %781 = vtanh.f32 %v464_v57  ;;  %v459_v59 = vmul.f32 %v457_v58, %v454_v56 }
 0x29a   :  { %v461_v60 = vmul.f32 0.044715, %v459_v59 }
 0x29c   :  { %v463_v61 = vadd.f32 %v461_v60, %v454_v56 }
 0x29e   :  { %v782_v62 = vpop.eup %781  ;;  %v465_v63 = vmul.f32 0.7978846, %v463_v61 }
 0x29f   :  { %v468_v0 = vadd.f32 1.0, %v782_v62 }
 0x2a0   :  { %783 = vtanh.f32 %v465_v63 }
 0x2a1   :  { %v470_v1 = vmul.f32 0.5, %v468_v0 }
 0x2a3   :  { %v472_v5 = vmul.f32 %v470_v1, %v452_v50 }
 0x2a5   :  { %v474_v7 = vadd.f32 %v472_v5, %v369_v37 }
 0x2a6   :  { %v784_v2 = vpop.eup %783 }
 0x2a7   :  { %v469_v3 = vadd.f32 1.0, %v784_v2 }
 0x2a9   :  { %v471_v4 = vmul.f32 0.5, %v469_v3 }
 0x2ab   :  { %v473_v6 = vmul.f32 %v471_v4, %v454_v56 }
 0x2ad   :  { %v475_v8 = vadd.f32 %v473_v6, %v370_v38 }
 0x2af   :  { %v476_v9 = vpack.c.bf16 %v475_v8, %v474_v7 }
 0x2b1   :  { %553 = vmatmul.bf16.vlgmr.msrb.gmra.mxu0 %v476_v9 }
 0x32e   :  { %v554_v10 = vpop.f32.mrf.mxu0 }
 0x32f   :  { %v555_v13 = vadd.f32 %v768_v11, %v554_v10 }
 0x336   :  { %v556_v12 = vpop.f32.mrf.mxu0 }
 0x337   :  { %v557_v14 = vadd.f32 %v768_v11, %v556_v12 }
 0x339   :  { %v752_v15 = vpack.c.bf16 %v557_v14, %v555_v13 }
 0x33b   :  { %753 = vst [vmem:[#allocation11] sm:$0xff] %v752_v15  }
 0x33c   :  { %575 = dma.vmem_to_hbm [thread:$0]  %s568_s10, 128, %s570_s1, [#allocation4], %s941_s13, %s941_s13, %s942_s14  }
 0x33d   :  { %935 = dma.done.wait [#allocation4], 128  }
 0x33e   :  { %936 = vsyncadd [#allocation4], 4294967168 }
 0x33f   :  { %580 = vsyncpa [#allocation3], 1 }
 0x340   :  { %581 = vsyncpa [#allocation6], 1 }
 0x341   :  { %582 = vsyncpa [#allocation9], 1 }
 0x342   :  { %583 = vsyncpa [#allocation4], 1 }

</bundles_post_ra>
